<compile_context>
chip_gen: v6e
topology: v6e:2x2x1
jax: 0.10.0
libtpu: 0.0.40
codegen_flags: <defaults>
</compile_context>

<pallas_src>
import jax
import jax.numpy as jnp
from jax.experimental import pallas as pl
from jax.experimental.pallas import tpu as pltpu

_VMEM_LIMIT = 32 * 1024 * 1024  # leaves headroom under v7x's 64 MiB physical VMEM


# ----------------------------- kernel helpers --------------------------------

def _xw_table(x_ref, w1s_ref, w1d_ref):
    """Stacked gather table [x @ W1_src ; x @ W1_dst] -> [2N, H] bf16."""
    x = x_ref[...]
    xw_s = jnp.dot(x, w1s_ref[...], preferred_element_type=jnp.float32)   # [N, H]
    xw_d = jnp.dot(x, w1d_ref[...], preferred_element_type=jnp.float32)   # [N, H]
    return jnp.concatenate([xw_s, xw_d], axis=0).astype(jnp.bfloat16)     # [2N, H]


def _edge_features(src_col, dst_col, xw2, b1):
    """ReLU(xw_s[src] + xw_d[dst] + b1) via ONE one-hot matmul with K = 2N.

    The single [TE, 2N] @ [2N, H] gather matmul is the only E-scaling matmul;
    it has full contraction depth and a lane-dense H=128 output.
    """
    two_n = xw2.shape[0]
    n = two_n // 2
    te = src_col.shape[0]
    iota = jax.lax.broadcasted_iota(jnp.int32, (te, two_n), 1)             # [TE, 2N]
    tgt = jnp.where(iota < n, src_col, dst_col + n)                        # [TE, 2N]
    sel = jnp.where(iota == tgt, 1.0, 0.0).astype(jnp.bfloat16)            # one-hot
    e = jnp.dot(sel, xw2, preferred_element_type=jnp.float32) + b1
    return jnp.maximum(e, 0.0)                                             # [TE, H] f32


# ----------------------------- fused kernels ---------------------------------

def edge_kernel(src_ref, dst_ref, x_ref, w1s_ref, w1d_ref, b1_ref, e_ref):
    # xw table recomputed per edge tile: two tiny [N,D]@[D,H] matmuls,
    # amortized over >=512-edge tiles at scale.
    xw2 = _xw_table(x_ref, w1s_ref, w1d_ref)
    e = _edge_features(src_ref[...], dst_ref[...], xw2, b1_ref[...])
    e_ref[...] = e.astype(e_ref.dtype)                                     # bf16 out


def node_kernel(src_ref, dstc_ref, dstr_ref, batch_ref, x_ref, w1s_ref, w1d_ref,
                b1_ref, w2p_ref, b2p_ref, z_ref):
    n = x_ref.shape[0]
    num_e = src_ref.shape[0]

    xw2 = _xw_table(x_ref, w1s_ref, w1d_ref)
    e = _edge_features(src_ref[...], dstc_ref[...], xw2, b1_ref[...])      # [E, H] f32

    # scatter-mean over destination nodes; 1/deg folded into the mask so the
    # MXU matmul produces the mean directly.  Aggregation kept in f32.
    iota_n = jax.lax.broadcasted_iota(jnp.int32, (n, num_e), 0)            # [N, E]
    scat = jnp.where(iota_n == dstr_ref[...], 1.0, 0.0)                    # [N, E] f32
    deg = jnp.sum(scat, axis=1, keepdims=True)                             # [N, 1]
    inv = pl.reciprocal(jnp.maximum(deg, 1.0), approx=True)                # EUP slot
    agg = jnp.dot(scat * inv, e, preferred_element_type=jnp.float32)       # [N, H] f32

    # output projection into a lane-dense (padded to 128) slab
    z = (jnp.dot(agg.astype(jnp.bfloat16), w2p_ref[...],
                 preferred_element_type=jnp.float32) + b2p_ref[...])       # [N, Opad]

    # fused batch index_select: exact one-hot f32 matmul, writes only [B, Opad]
    b = batch_ref.shape[0]
    iota_b = jax.lax.broadcasted_iota(jnp.int32, (b, n), 1)                # [B, N]
    bsel = jnp.where(iota_b == batch_ref[...], 1.0, 0.0)
    z_ref[...] = jnp.dot(bsel, z, preferred_element_type=jnp.float32).astype(z_ref.dtype)


# ----------------------------- wrappers --------------------------------------

@jax.jit
def edge_embeddings(src_col, dst_col, x, w1s, w1d, b1):
    E = src_col.shape[0]
    N, D = x.shape
    H = w1s.shape[1]
    te = min(512, E)                      # edge-tile size; grid=(1,) at toy size
    grid = (pl.cdiv(E, te),)
    return pl.pallas_call(
        edge_kernel,
        out_shape=jax.ShapeDtypeStruct((E, H), jnp.bfloat16),
        grid=grid,
        in_specs=[
            pl.BlockSpec((te, 1), lambda i: (i, 0)),
            pl.BlockSpec((te, 1), lambda i: (i, 0)),
            pl.BlockSpec((N, D), lambda i: (0, 0)),
            pl.BlockSpec((D, H), lambda i: (0, 0)),
            pl.BlockSpec((D, H), lambda i: (0, 0)),
            pl.BlockSpec((1, H), lambda i: (0, 0)),
        ],
        out_specs=pl.BlockSpec((te, H), lambda i: (i, 0)),
        compiler_params=pltpu.CompilerParams(
            dimension_semantics=("parallel",),
            vmem_limit_bytes=_VMEM_LIMIT),
    )(src_col, dst_col, x, w1s, w1d, b1)


@jax.jit
def node_embeddings(src_col, dst_col, dst_row, batch_col, x, w1s, w1d, b1, w2p, b2p):
    N, D = x.shape
    E = src_col.shape[0]
    H = w1s.shape[1]
    B = batch_col.shape[0]
    Opad = w2p.shape[1]
    # TODO(synk): at scale, tile the edge contraction axis ("arbitrary") and the
    # node-row axis ("parallel") with >=512-row blocks; single block is optimal
    # at these toy sizes.
    return pl.pallas_call(
        node_kernel,
        out_shape=jax.ShapeDtypeStruct((B, Opad), jnp.float32),
        grid=(1,),
        in_specs=[
            pl.BlockSpec((E, 1), lambda i: (0, 0)),
            pl.BlockSpec((E, 1), lambda i: (0, 0)),
            pl.BlockSpec((1, E), lambda i: (0, 0)),
            pl.BlockSpec((B, 1), lambda i: (0, 0)),
            pl.BlockSpec((N, D), lambda i: (0, 0)),
            pl.BlockSpec((D, H), lambda i: (0, 0)),
            pl.BlockSpec((D, H), lambda i: (0, 0)),
            pl.BlockSpec((1, H), lambda i: (0, 0)),
            pl.BlockSpec((H, Opad), lambda i: (0, 0)),
            pl.BlockSpec((1, Opad), lambda i: (0, 0)),
        ],
        out_specs=pl.BlockSpec((B, Opad), lambda i: (0, 0)),
        compiler_params=pltpu.CompilerParams(
            dimension_semantics=("arbitrary",),
            vmem_limit_bytes=_VMEM_LIMIT),
    )(src_col, dst_col, dst_row, batch_col, x, w1s, w1d, b1, w2p, b2p)


# ----------------------------- module ----------------------------------------

class EnhancedEmbeddingLookupPallas:
    def __init__(self, num_nodes, emb_dim, edge_index, hidden_dim=128, *, key):
        self.num_nodes = int(num_nodes)
        self.emb_dim = int(emb_dim)
        self.hidden_dim = int(hidden_dim)

        src = edge_index[0].astype(jnp.int32)
        dst = edge_index[1].astype(jnp.int32)
        E = src.shape[0]
        self.num_edges = E
        self.src_col = src.reshape(E, 1)
        self.dst_col = dst.reshape(E, 1)
        self.dst_row = dst.reshape(1, E)

        k_emb, k_w1s, k_w1d, k_b1, k_w2, k_b2 = jax.random.split(key, 6)
        # nn.Embedding default init: N(0, 1); params stored bf16, f32 accumulation in-kernel.
        self.emb = jax.random.normal(k_emb, (num_nodes, emb_dim), jnp.float32).astype(jnp.bfloat16)
        # W1 split into src/dst halves == concat([x_src, x_dst]) @ W1 (synthetic weights).
        self.w1_src = (jax.random.normal(k_w1s, (emb_dim, hidden_dim), jnp.float32) * 0.05
                       ).astype(jnp.bfloat16)
        self.w1_dst = (jax.random.normal(k_w1d, (emb_dim, hidden_dim), jnp.float32) * 0.05
                       ).astype(jnp.bfloat16)
        self.b1 = jax.random.normal(k_b1, (1, hidden_dim), jnp.float32) * 0.05
        self.w2 = (jax.random.normal(k_w2, (hidden_dim, emb_dim), jnp.float32) * 0.05
                   ).astype(jnp.bfloat16)
        self.b2 = jax.random.normal(k_b2, (1, emb_dim), jnp.float32) * 0.05

        # lane-dense padded projection: output feature dim padded to 128 so the
        # final store is an unmasked vst; wrapper slices back to emb_dim.
        opad = ((emb_dim + 127) // 128) * 128
        self.out_pad = opad
        self.w2_pad = jnp.zeros((hidden_dim, opad), jnp.bfloat16).at[:, :emb_dim].set(self.w2)
        self.b2_pad = jnp.zeros((1, opad), jnp.float32).at[:, :emb_dim].set(self.b2)

    def forward(self, batch, return_edge_embeddings=False):
        if return_edge_embeddings:
            z = edge_embeddings(self.src_col, self.dst_col, self.emb,
                                self.w1_src, self.w1_dst, self.b1)         # [E, H] bf16
            # TODO(synk): edge-path batch gather kept as thin JAX glue (tiny).
            return z if batch is None else jnp.take(z, batch, axis=0)
        # node path: final index_select fused into the kernel (identity gather
        # over all nodes when batch is None).
        if batch is None:
            b_ids = jnp.arange(self.num_nodes, dtype=jnp.int32)
        else:
            b_ids = batch.astype(jnp.int32)
        z_pad = node_embeddings(self.src_col, self.dst_col, self.dst_row,
                                b_ids.reshape(-1, 1),
                                self.emb, self.w1_src, self.w1_dst, self.b1,
                                self.w2_pad, self.b2_pad)                  # [B, opad]
        return z_pad[:, :self.emb_dim]


# ----------------------------- reference -------------------------------------

def reference_forward(mod, batch, return_edge_embeddings=False):
    hp = jax.lax.Precision.HIGHEST
    x = mod.emb.astype(jnp.float32)
    w1s = mod.w1_src.astype(jnp.float32)
    w1d = mod.w1_dst.astype(jnp.float32)
    w2 = mod.w2.astype(jnp.float32)
    src = mod.src_col[:, 0]
    dst = mod.dst_col[:, 0]
    e = jnp.maximum(jnp.dot(x[src], w1s, precision=hp)
                    + jnp.dot(x[dst], w1d, precision=hp) + mod.b1, 0.0)
    if return_edge_embeddings:
        z = e
    else:
        agg = jax.ops.segment_sum(e, dst, num_segments=mod.num_nodes)
        deg = jax.ops.segment_sum(jnp.ones((e.shape[0], 1), jnp.float32), dst,
                                  num_segments=mod.num_nodes)
        agg = agg / jnp.maximum(deg, 1.0)
        z = jnp.dot(agg, w2, precision=hp) + mod.b2
    return z if batch is None else jnp.take(z, batch, axis=0)


if __name__ == "__main__":
    key = jax.random.PRNGKey(0)
    k_edges, k_batch, k_params = jax.random.split(key, 3)

    num_nodes, emb_dim, hidden_dim, num_edges = 32, 16, 128, 64
    edge_index = jax.random.randint(k_edges, (2, num_edges), 0, num_nodes, dtype=jnp.int32)
    batch = jax.random.randint(k_batch, (8,), 0, num_nodes, dtype=jnp.int32)

    mod = EnhancedEmbeddingLookupPallas(num_nodes, emb_dim, edge_index,
                                        hidden_dim=hidden_dim, key=k_params)

    z = jax.block_until_ready(mod.forward(batch))                              # [8, 16]
    z_all = jax.block_until_ready(mod.forward(None))                           # [32, 16]
    ze = jax.block_until_ready(mod.forward(None, return_edge_embeddings=True)) # [64, 128]

    assert z.shape == (8, emb_dim)
    assert z_all.shape == (num_nodes, emb_dim)
    assert ze.shape == (num_edges, hidden_dim)

    z_ref = reference_forward(mod, batch)
    z_all_ref = reference_forward(mod, None)
    ze_ref = reference_forward(mod, None, return_edge_embeddings=True)
    # bf16 operands / bf16 edge output with f32 accumulation: bf16-level tolerance.
    assert jnp.allclose(ze.astype(jnp.float32), ze_ref, atol=1e-2, rtol=1e-2), \
        "edge-embedding mismatch"
    assert jnp.allclose(z, z_ref, atol=1e-2, rtol=1e-2), "node-embedding mismatch"
    assert jnp.allclose(z_all, z_all_ref, atol=1e-2, rtol=1e-2), "node-embedding (all) mismatch"

    print("KERNEL_OK")
</pallas_src>

<mosaic_0001>
module attributes {stable_mosaic.version = 11 : i64} {
  func.func @node_kernel(%arg0: i32, %arg1: memref<64x1xi32, #tpu.memory_space<vmem>>, %arg2: memref<64x1xi32, #tpu.memory_space<vmem>>, %arg3: memref<1x64xi32, #tpu.memory_space<vmem>>, %arg4: memref<8x1xi32, #tpu.memory_space<vmem>>, %arg5: memref<32x16xbf16, #tpu.memory_space<vmem>>, %arg6: memref<16x128xbf16, #tpu.memory_space<vmem>>, %arg7: memref<16x128xbf16, #tpu.memory_space<vmem>>, %arg8: memref<1x128xf32, #tpu.memory_space<vmem>>, %arg9: memref<128x128xbf16, #tpu.memory_space<vmem>>, %arg10: memref<1x128xf32, #tpu.memory_space<vmem>>, %arg11: memref<8x128xf32, #tpu.memory_space<vmem>>) attributes {dimension_semantics = [#tpu.dimension_semantics<arbitrary>], iteration_bounds = array<i64: 1>, scalar_prefetch = 0 : i64, scratch_operands = 0 : i64, tpu.core_type = #tpu.core_type<tc>, window_params = [{pipeline_mode = #tpu.pipeline_mode<synchronous>, transform_indices = @transform_0, window_bounds = array<i64: 64, 1>}, {pipeline_mode = #tpu.pipeline_mode<synchronous>, transform_indices = @transform_1, window_bounds = array<i64: 64, 1>}, {pipeline_mode = #tpu.pipeline_mode<synchronous>, transform_indices = @transform_2, window_bounds = array<i64: 1, 64>}, {pipeline_mode = #tpu.pipeline_mode<synchronous>, transform_indices = @transform_3, window_bounds = array<i64: 8, 1>}, {pipeline_mode = #tpu.pipeline_mode<synchronous>, transform_indices = @transform_4, window_bounds = array<i64: 32, 16>}, {pipeline_mode = #tpu.pipeline_mode<synchronous>, transform_indices = @transform_5, window_bounds = array<i64: 16, 128>}, {pipeline_mode = #tpu.pipeline_mode<synchronous>, transform_indices = @transform_6, window_bounds = array<i64: 16, 128>}, {pipeline_mode = #tpu.pipeline_mode<synchronous>, transform_indices = @transform_7, window_bounds = array<i64: 1, 128>}, {pipeline_mode = #tpu.pipeline_mode<synchronous>, transform_indices = @transform_8, window_bounds = array<i64: 128, 128>}, {pipeline_mode = #tpu.pipeline_mode<synchronous>, transform_indices = @transform_9, window_bounds = array<i64: 1, 128>}, {pipeline_mode = #tpu.pipeline_mode<synchronous>, transform_indices = @transform_10, window_bounds = array<i64: 8, 128>}]} {
    %c0 = arith.constant 0 : index
    %c0_0 = arith.constant 0 : index
    %0 = vector.load %arg5[%c0, %c0_0] : memref<32x16xbf16, #tpu.memory_space<vmem>>, vector<32x16xbf16>
    %c0_1 = arith.constant 0 : index
    %c0_2 = arith.constant 0 : index
    %1 = vector.load %arg6[%c0_1, %c0_2] : memref<16x128xbf16, #tpu.memory_space<vmem>>, vector<16x128xbf16>
    %cst = arith.constant dense<0.000000e+00> : vector<32x128xf32>
    %2 = tpu.matmul %0, %1, %cst {dimension_numbers = #tpu.dot_dimension_numbers<[1], [0], [0], [1], [0, 0, 1, 1], [], []>} : vector<32x16xbf16>, vector<16x128xbf16>, vector<32x128xf32> -> vector<32x128xf32>
    %c0_3 = arith.constant 0 : index
    %c0_4 = arith.constant 0 : index
    %3 = vector.load %arg7[%c0_3, %c0_4] : memref<16x128xbf16, #tpu.memory_space<vmem>>, vector<16x128xbf16>
    %cst_5 = arith.constant dense<0.000000e+00> : vector<32x128xf32>
    %4 = tpu.matmul %0, %3, %cst_5 {dimension_numbers = #tpu.dot_dimension_numbers<[1], [0], [0], [1], [0, 0, 1, 1], [], []>} : vector<32x16xbf16>, vector<16x128xbf16>, vector<32x128xf32> -> vector<32x128xf32>
    %5 = tpu.concatenate %2, %4 in 0 : vector<32x128xf32>, vector<32x128xf32> -> vector<64x128xf32>
    %6 = arith.truncf %5 : vector<64x128xf32> to vector<64x128xbf16>
    %c0_6 = arith.constant 0 : index
    %c0_7 = arith.constant 0 : index
    %7 = vector.load %arg1[%c0_6, %c0_7] : memref<64x1xi32, #tpu.memory_space<vmem>>, vector<64x1xi32>
    %c0_8 = arith.constant 0 : index
    %c0_9 = arith.constant 0 : index
    %8 = vector.load %arg2[%c0_8, %c0_9] : memref<64x1xi32, #tpu.memory_space<vmem>>, vector<64x1xi32>
    %c0_10 = arith.constant 0 : index
    %c0_11 = arith.constant 0 : index
    %9 = vector.load %arg8[%c0_10, %c0_11] : memref<1x128xf32, #tpu.memory_space<vmem>>, vector<1x128xf32>
    %10 = tpu.iota {dimensions = array<i32: 1>} : vector<64x64xi32>
    %c32_i32 = arith.constant 32 : i32
    %11 = vector.broadcast %c32_i32 : i32 to vector<64x64xi32>
    %12 = arith.cmpi slt, %10, %11 : vector<64x64xi32>
    %c32_i32_12 = arith.constant 32 : i32
    %13 = vector.broadcast %c32_i32_12 : i32 to vector<64x1xi32>
    %14 = arith.addi %8, %13 : vector<64x1xi32>
    %15 = vector.shape_cast %7 : vector<64x1xi32> to vector<64x1xi32>
    %16 = vector.broadcast %15 : vector<64x1xi32> to vector<64x64xi32>
    %17 = vector.shape_cast %14 : vector<64x1xi32> to vector<64x1xi32>
    %18 = vector.broadcast %17 : vector<64x1xi32> to vector<64x64xi32>
    %19 = arith.select %12, %16, %18 : vector<64x64xi1>, vector<64x64xi32>
    %20 = arith.cmpi eq, %10, %19 : vector<64x64xi32>
    %cst_13 = arith.constant 1.000000e+00 : f32
    %cst_14 = arith.constant 0.000000e+00 : f32
    %21 = vector.broadcast %cst_13 : f32 to vector<64x64xf32>
    %22 = vector.broadcast %cst_14 : f32 to vector<64x64xf32>
    %23 = arith.select %20, %21, %22 : vector<64x64xi1>, vector<64x64xf32>
    %24 = arith.truncf %23 : vector<64x64xf32> to vector<64x64xbf16>
    %cst_15 = arith.constant dense<0.000000e+00> : vector<64x128xf32>
    %25 = tpu.matmul %24, %6, %cst_15 {dimension_numbers = #tpu.dot_dimension_numbers<[1], [0], [0], [1], [0, 0, 1, 1], [], []>} : vector<64x64xbf16>, vector<64x128xbf16>, vector<64x128xf32> -> vector<64x128xf32>
    %26 = vector.broadcast %9 : vector<1x128xf32> to vector<64x128xf32>
    %27 = arith.addf %25, %26 : vector<64x128xf32>
    %cst_16 = arith.constant 0.000000e+00 : f32
    %28 = vector.broadcast %cst_16 : f32 to vector<64x128xf32>
    %29 = arith.maximumf %27, %28 : vector<64x128xf32>
    %30 = tpu.iota {dimensions = array<i32: 0>} : vector<32x64xi32>
    %c0_17 = arith.constant 0 : index
    %c0_18 = arith.constant 0 : index
    %31 = vector.load %arg3[%c0_17, %c0_18] : memref<1x64xi32, #tpu.memory_space<vmem>>, vector<1x64xi32>
    %32 = vector.broadcast %31 : vector<1x64xi32> to vector<32x64xi32>
    %33 = arith.cmpi eq, %30, %32 : vector<32x64xi32>
    %cst_19 = arith.constant 1.000000e+00 : f32
    %cst_20 = arith.constant 0.000000e+00 : f32
    %34 = vector.broadcast %cst_19 : f32 to vector<32x64xf32>
    %35 = vector.broadcast %cst_20 : f32 to vector<32x64xf32>
    %36 = arith.select %33, %34, %35 : vector<32x64xi1>, vector<32x64xf32>
    %cst_21 = arith.constant dense<0.000000e+00> : vector<32xf32>
    %37 = vector.multi_reduction <add>, %36, %cst_21 [1] : vector<32x64xf32> to vector<32xf32>
    %38 = vector.shape_cast %37 : vector<32xf32> to vector<32x1xf32>
    %cst_22 = arith.constant 1.000000e+00 : f32
    %39 = vector.broadcast %cst_22 : f32 to vector<32x1xf32>
    %40 = arith.maximumf %38, %39 : vector<32x1xf32>
    %41 = tpu.reciprocal %40 {approx = true} : vector<32x1xf32> -> vector<32x1xf32>
    %42 = vector.broadcast %41 : vector<32x1xf32> to vector<32x64xf32>
    %43 = arith.mulf %36, %42 : vector<32x64xf32>
    %cst_23 = arith.constant dense<0.000000e+00> : vector<32x128xf32>
    %44 = tpu.matmul %43, %29, %cst_23 {dimension_numbers = #tpu.dot_dimension_numbers<[1], [0], [0], [1], [0, 0, 1, 1], [], []>} : vector<32x64xf32>, vector<64x128xf32>, vector<32x128xf32> -> vector<32x128xf32>
    %45 = arith.truncf %44 : vector<32x128xf32> to vector<32x128xbf16>
    %c0_24 = arith.constant 0 : index
    %c0_25 = arith.constant 0 : index
    %46 = vector.load %arg9[%c0_24, %c0_25] : memref<128x128xbf16, #tpu.memory_space<vmem>>, vector<128x128xbf16>
    %cst_26 = arith.constant dense<0.000000e+00> : vector<32x128xf32>
    %47 = tpu.matmul %45, %46, %cst_26 {dimension_numbers = #tpu.dot_dimension_numbers<[1], [0], [0], [1], [0, 0, 1, 1], [], []>} : vector<32x128xbf16>, vector<128x128xbf16>, vector<32x128xf32> -> vector<32x128xf32>
    %c0_27 = arith.constant 0 : index
    %c0_28 = arith.constant 0 : index
    %48 = vector.load %arg10[%c0_27, %c0_28] : memref<1x128xf32, #tpu.memory_space<vmem>>, vector<1x128xf32>
    %49 = vector.broadcast %48 : vector<1x128xf32> to vector<32x128xf32>
    %50 = arith.addf %47, %49 : vector<32x128xf32>
    %51 = tpu.iota {dimensions = array<i32: 1>} : vector<8x32xi32>
    %c0_29 = arith.constant 0 : index
    %c0_30 = arith.constant 0 : index
    %52 = vector.load %arg4[%c0_29, %c0_30] : memref<8x1xi32, #tpu.memory_space<vmem>>, vector<8x1xi32>
    %53 = vector.broadcast %52 : vector<8x1xi32> to vector<8x32xi32>
    %54 = arith.cmpi eq, %51, %53 : vector<8x32xi32>
    %cst_31 = arith.constant 1.000000e+00 : f32
    %cst_32 = arith.constant 0.000000e+00 : f32
    %55 = vector.broadcast %cst_31 : f32 to vector<8x32xf32>
    %56 = vector.broadcast %cst_32 : f32 to vector<8x32xf32>
    %57 = arith.select %54, %55, %56 : vector<8x32xi1>, vector<8x32xf32>
    %cst_33 = arith.constant dense<0.000000e+00> : vector<8x128xf32>
    %58 = tpu.matmul %57, %50, %cst_33 {dimension_numbers = #tpu.dot_dimension_numbers<[1], [0], [0], [1], [0, 0, 1, 1], [], []>} : vector<8x32xf32>, vector<32x128xf32>, vector<8x128xf32> -> vector<8x128xf32>
    %c0_34 = arith.constant 0 : index
    %c0_35 = arith.constant 0 : index
    %59 = vector.load %arg11[%c0_34, %c0_35] : memref<8x128xf32, #tpu.memory_space<vmem>>, vector<8x128xf32>
    tpu.vector_store %arg11[%c0_34, %c0_35], %58 {strides = array<i32>} : memref<8x128xf32, #tpu.memory_space<vmem>>, vector<8x128xf32>,
    return
  }
  func.func @transform_0(%arg0: i32) -> (i32, i32) {
    %c0_i32 = arith.constant 0 : i32
    %c0_i32_0 = arith.constant 0 : i32
    %c0_i32_1 = arith.constant 0 : i32
    return %c0_i32, %c0_i32_0 : i32, i32
  }
  func.func @transform_1(%arg0: i32) -> (i32, i32) {
    %c0_i32 = arith.constant 0 : i32
    %c0_i32_0 = arith.constant 0 : i32
    %c0_i32_1 = arith.constant 0 : i32
    return %c0_i32, %c0_i32_0 : i32, i32
  }
  func.func @transform_2(%arg0: i32) -> (i32, i32) {
    %c0_i32 = arith.constant 0 : i32
    %c0_i32_0 = arith.constant 0 : i32
    %c0_i32_1 = arith.constant 0 : i32
    return %c0_i32, %c0_i32_0 : i32, i32
  }
  func.func @transform_3(%arg0: i32) -> (i32, i32) {
    %c0_i32 = arith.constant 0 : i32
    %c0_i32_0 = arith.constant 0 : i32
    %c0_i32_1 = arith.constant 0 : i32
    return %c0_i32, %c0_i32_0 : i32, i32
  }
  func.func @transform_4(%arg0: i32) -> (i32, i32) {
    %c0_i32 = arith.constant 0 : i32
    %c0_i32_0 = arith.constant 0 : i32
    %c0_i32_1 = arith.constant 0 : i32
    return %c0_i32, %c0_i32_0 : i32, i32
  }
  func.func @transform_5(%arg0: i32) -> (i32, i32) {
    %c0_i32 = arith.constant 0 : i32
    %c0_i32_0 = arith.constant 0 : i32
    %c0_i32_1 = arith.constant 0 : i32
    return %c0_i32, %c0_i32_0 : i32, i32
  }
  func.func @transform_6(%arg0: i32) -> (i32, i32) {
    %c0_i32 = arith.constant 0 : i32
    %c0_i32_0 = arith.constant 0 : i32
    %c0_i32_1 = arith.constant 0 : i32
    return %c0_i32, %c0_i32_0 : i32, i32
  }
  func.func @transform_7(%arg0: i32) -> (i32, i32) {
    %c0_i32 = arith.constant 0 : i32
    %c0_i32_0 = arith.constant 0 : i32
    %c0_i32_1 = arith.constant 0 : i32
    return %c0_i32, %c0_i32_0 : i32, i32
  }
  func.func @transform_8(%arg0: i32) -> (i32, i32) {
    %c0_i32 = arith.constant 0 : i32
    %c0_i32_0 = arith.constant 0 : i32
    %c0_i32_1 = arith.constant 0 : i32
    return %c0_i32, %c0_i32_0 : i32, i32
  }
  func.func @transform_9(%arg0: i32) -> (i32, i32) {
    %c0_i32 = arith.constant 0 : i32
    %c0_i32_0 = arith.constant 0 : i32
    %c0_i32_1 = arith.constant 0 : i32
    return %c0_i32, %c0_i32_0 : i32, i32
  }
  func.func @transform_10(%arg0: i32) -> (i32, i32) {
    %c0_i32 = arith.constant 0 : i32
    %c0_i32_0 = arith.constant 0 : i32
    %c0_i32_1 = arith.constant 0 : i32
    return %c0_i32, %c0_i32_0 : i32, i32
  }
}

</mosaic_0001>

<bundles_post_ra>
// kernel: node_embeddings.1
= control target key start
LH: loop header
LB: loop body
LE: loop exit
PB: predicated region body
PF: predicated region fallthrough
CT: control target
= control target key end

     0   :  { %v926_v1 = vmov 0   ;;  %vm59_vm0 = vcmask 130048   ;;  %s1158_s0 = inlined_call_operand.vmem [shape: s32[64,1], index: 0, kind: input, shape index: {}]   ;;  %s1159_s1 = inlined_call_operand.vmem [shape: s32[64,1], index: 1, kind: input, shape index: {}]   ;;  %s1160_s2 = inlined_call_operand.vmem [shape: s32[1,64], index: 2, kind: input, shape index: {}]   ;;  %s1161_s3 = inlined_call_operand.vmem [shape: s32[8,1], index: 3, kind: input, shape index: {}]   ;;  %s1162_s4 = inlined_call_operand.vmem [shape: bf16[32,16], index: 4, kind: input, shape index: {}]   ;;  %s1163_s5 = inlined_call_operand.vmem [shape: bf16[16,128], index: 5, kind: input, shape index: {}]   ;;  %s1164_s6 = inlined_call_operand.vmem [shape: bf16[16,128], index: 6, kind: input, shape index: {}]   ;;  %s1165_s7 = inlined_call_operand.vmem [shape: f32[1,128], index: 7, kind: input, shape index: {}]   ;;  %s1166_s8 = inlined_call_operand.vmem [shape: bf16[128,128], index: 8, kind: input, shape index: {}]   ;;  %s1167_s9 = inlined_call_operand.vmem [shape: f32[1,128], index: 9, kind: input, shape index: {}]   ;;  %s1168_s10 = inlined_call_operand.hbm [shape: f32[8,128], index: 10, kind: output, shape index: {}]  }
   0x1   :  { %v184_v0 = vld [vmem:[%s1159_s1] sm:$0xff]  ;;  %883 = vset.pattern.permute.xlu1 %v926_v1  ;;  %882 = vset.pattern.permute.xlu0 %v926_v1  ;;  %v185_v6 = vld [vmem:[%s1159_s1 + $0x8] sm:$0xff]  ;;  %v179_v10 = vld [vmem:[%s1158_s0 + $0x18] sm:$0xff] }
   0x2   :  { %v196_v2 = vadd.s32 32, %v184_v0  ;;  %v884_v3 = vld [vmem:[%s1164_s6] sm:$0xff]   ;;  %v197_v7 = vadd.s32 32, %v185_v6  ;;  %v887_v8 = vld [vmem:[%s1162_s4 + $0x8] sm:$0xff]   ;;  %v187_v11 = vld [vmem:[%s1159_s1 + $0x18] sm:$0xff] }
   0x3   :  { %v885_v4 = vld [vmem:[%s1163_s5] sm:$0xff]   ;;  %803 = vmatprep.subr.bf16.mxu1 %v884_v3  ;;  %v177_v12 = vld [vmem:[%s1158_s0 + $0x8] sm:$0xff]  ;;  %v199_v13 = vadd.s32 32, %v187_v11  ;;  %v178_v14 = vld [vmem:[%s1158_s0 + $0x10] sm:$0xff] }
   0x4   :  { %229 = vperm.xlu1 %883, %v196_v2   ;;  %v886_v5 = vld [vmem:[%s1162_s4] sm:$0xff]   ;;  %804 = vmatpush3.bf16.msra.mxu1 %v884_v3  ;;  %v186_v15 = vld [vmem:[%s1159_s1 + $0x10] sm:$0xff]  ;;  %v181_v16 = vld [vmem:[%s1158_s0 + $0x28] sm:$0xff] }
   0x5   :  { %797 = vmatprep.subr.bf16.mxu0 %v885_v4  ;;  %805 = vmatprep.mubr.msk.bf16.mxu1 %vm59_vm0, %v886_v5  ;;  %v176_v9 = vld [vmem:[%s1158_s0] sm:$0xff]  ;;  %v189_v17 = vld [vmem:[%s1159_s1 + $0x28] sm:$0xff]  ;;  %v198_v18 = vadd.s32 32, %v186_v15 }
   0x6   :  { %798 = vmatpush3.bf16.msra.mxu0 %v885_v4  ;;  %799 = vmatprep.mubr.msk.bf16.mxu0 %vm59_vm0, %v886_v5 }
   0x7   :  { %806 = vmatmul.mubr.msk.bf16.vlgmr.msra.gmra.mxu1 %vm59_vm0, %v887_v8  ;;  %205 = vperm.xlu0 %882, %v176_v9  }
   0x8   :  { %232 = vperm.xlu1 %883, %v197_v7  }
   0x9   :  { %800 = vmatmul.mubr.msk.bf16.vlgmr.msra.gmra.mxu0 %vm59_vm0, %v887_v8 }
   0xb   :  { %208 = vperm.xlu0 %882, %v177_v12  }
   0xc   :  { %214 = vperm.xlu1 %883, %v179_v10  }
   0xf   :  { %211 = vperm.xlu0 %882, %v178_v14  }
  0x10   :  { %238 = vperm.xlu1 %883, %v199_v13  }
  0x11   :  { %15 = vsyncpa [#allocation3], 0  ;;  %v201_v19 = vadd.s32 32, %v189_v17  ;;  %v180_v20 = vld [vmem:[%s1158_s0 + $0x20] sm:$0xff]  ;;  %v183_v22 = vld [vmem:[%s1158_s0 + $0x38] sm:$0xff]  ;;  %v193_v29 = vlaneseq  ;;  %vm286_vm2 = vcmask 523264  }
  0x12   :  { %v188_v21 = vld [vmem:[%s1159_s1 + $0x20] sm:$0xff]  ;;  %v191_v23 = vld [vmem:[%s1159_s1 + $0x38] sm:$0xff]  ;;  %v182_v26 = vld [vmem:[%s1158_s0 + $0x30] sm:$0xff]  ;;  %v927_v33 = vmov 0.0   ;;  %vm928_vm15 = vmmov 0  }
  0x13   :  { %235 = vperm.xlu0 %882, %v198_v18   ;;  %v200_v24 = vadd.s32 32, %v188_v21  ;;  %v203_v25 = vadd.s32 32, %v191_v23  ;;  %v190_v27 = vld [vmem:[%s1159_s1 + $0x30] sm:$0xff]  ;;  %v373_v30 = vshrl.u32 %v193_v29, 7  ;;  %v741_v32 = vld [vmem:[%s1160_s2] ss:$0 sm:$0xff] }
  0x14   :  { %220 = vperm.xlu1 %883, %v181_v16   ;;  %v202_v28 = vadd.s32 32, %v190_v27  ;;  %v633_v36 = vld [vmem:[%s1161_s3] sm:$0xff]  ;;  %v1071_v45 = vand.u32 127, %v193_v29 }
  0x15   :  { %v374_v31 = vadd.s32 8, %v373_v30  ;;  %vm382_vm3 = vcmp.eq.s32.totalorder %v373_v30, %v741_v32  ;;  %v375_v37 = vadd.s32 16, %v373_v30  ;;  %v376_v38 = vadd.s32 24, %v373_v30 }
  0x16   :  { %v1057_v39 = vsel %vm382_vm3, 1.0, %v927_v33  ;;  %vm195_vm6 = vcmp.lt.s32.totalorder %v1071_v45, 32 }
  0x17   :  { %217 = vperm.xlu0 %882, %v180_v20   ;;  %vm383_vm1 = vcmp.eq.s32.totalorder %v374_v31, %v741_v32  ;;  %v390_v40 = vsel %vm286_vm2, %v1057_v39, 0.0  ;;  %vm384_vm4 = vcmp.eq.s32.totalorder %v375_v37, %v741_v32  ;;  %vm385_vm5 = vcmp.eq.s32.totalorder %v376_v38, %v741_v32  ;;  %v889_v37 = vld [vmem:[%s1166_s8 + $0x30] sm:$0xff]   ;;  %v890_v38 = vld [vmem:[%s1166_s8 + $0x28] sm:$0xff]  }
  0x18   :  { %244 = vperm.xlu1 %883, %v201_v19   ;;  %v1049_v34 = vsel %vm383_vm1, 1.0, %v927_v33  ;;  %v1062_v41 = vsel %vm384_vm4, 1.0, %v927_v33  ;;  %v1067_v43 = vsel %vm385_vm5, 1.0, %v927_v33  ;;  %vm639_vm1 = vcmask 261120  }
  0x19   :  { %v393_v35 = vsel %vm286_vm2, %v1049_v34, 0.0  ;;  %v396_v42 = vsel %vm286_vm2, %v1062_v41, 0.0  ;;  %v399_v44 = vsel %vm286_vm2, %v1067_v43, 0.0 }
  0x1b   :  { %241 = vperm.xlu0 %882, %v200_v24  }
  0x1c   :  { %226 = vperm.xlu1 %883, %v183_v22  }
  0x1f   :  { %223 = vperm.xlu0 %882, %v182_v26  }
  0x20   :  { %250 = vperm.xlu1 %883, %v203_v25  }
  0x23   :  { %247 = vperm.xlu0 %882, %v202_v28  }
  0x42   :  { %391 = vadd.xlane.f32.xlu0 %v390_v40  ;;  %v892_v40 = vld [vmem:[%s1166_s8 + $0x18] sm:$0xff]  }
  0x44   :  { %394 = vadd.xlane.f32.xlu1 %v393_v35 }
  0x46   :  { %397 = vadd.xlane.f32.xlu0 %v396_v42  ;;  %v893_v42 = vld [vmem:[%s1166_s8 + $0x10] sm:$0xff]  }
  0x4a   :  { %400 = vadd.xlane.f32.xlu0 %v399_v44 }
  0x55   :  { %635 = vperm.xlu1 %883, %v633_v36   ;;  %v888_v36 = vld [vmem:[%s1166_s8 + $0x38] sm:$0xff]  }
  0x56   :  { %847 = vmatprep.subr.bf16.mxu0 %v888_v36 }
  0x57   :  { %848 = vmatpush3.bf16.msra.mxu0 %v888_v36 }
  0x58   :  { %849 = vmatprep.subr.bf16.mxu0 %v889_v37 }
  0x5b   :  { %850 = vmatpush3.bf16.msra.mxu0 %v889_v37 }
  0x5c   :  { %851 = vmatprep.subr.bf16.mxu0 %v890_v38 }
  0x5f   :  { %852 = vmatpush3.bf16.msra.mxu0 %v890_v38 }
  0x7f   :  { %v230_v46 = vpop.permute.xlu1 %229 }
  0x82   :  { %v206_v47 = vpop.permute.xlu0 %205 }
  0x83   :  { %v252_v48 = vsel %vm195_vm6, %v206_v47, %v230_v46  ;;  %v233_v49 = vpop.permute.xlu1 %232 }
  0x84   :  { %vm260_vm7 = vcmp.eq.s32.totalorder %v1071_v45, %v252_v48 }
  0x85   :  { %v268_v51 = vsel %vm260_vm7, 1.0, %v927_v33 }
  0x86   :  { %v209_v50 = vpop.permute.xlu0 %208 }
  0x87   :  { %v253_v52 = vsel %vm195_vm6, %v209_v50, %v233_v49  ;;  %v215_v55 = vpop.permute.xlu1 %214 }
  0x88   :  { %vm261_vm8 = vcmp.eq.s32.totalorder %v1071_v45, %v253_v52 }
  0x89   :  { %v269_v53 = vsel %vm261_vm8, 1.0, %v927_v33 }
  0x8a   :  { %v276_v54 = vpack.c.bf16 %v269_v53, %v268_v51  ;;  %v212_v56 = vpop.permute.xlu0 %211 }
  0x8b   :  { %v239_v57 = vpop.permute.xlu1 %238 }
  0x8c   :  { %817 = vmatprep.mubr.msk.bf16.mxu1 %vm286_vm2, %v276_v54  ;;  %v255_v11 = vsel %vm195_vm6, %v215_v55, %v239_v57 }
  0x8d   :  { %vm263_vm9 = vcmp.eq.s32.totalorder %v1071_v45, %v255_v11 }
  0x8e   :  { %v236_v58 = vpop.permute.xlu0 %235  ;;  %v271_v19 = vsel %vm263_vm9, 1.0, %v927_v33 }
  0x8f   :  { %v221_v59 = vpop.permute.xlu1 %220  ;;  %v254_v12 = vsel %vm195_vm6, %v212_v56, %v236_v58  ;;  %v736_v56 = vld [vmem:[%s1165_s7] ss:$0 sm:$0xff] }
  0x90   :  { %vm262_vm10 = vcmp.eq.s32.totalorder %v1071_v45, %v254_v12 }
  0x91   :  { %v270_v20 = vsel %vm262_vm10, 1.0, %v927_v33 }
  0x92   :  { %v218_v60 = vpop.permute.xlu0 %217  ;;  %v277_v25 = vpack.c.bf16 %v271_v19, %v270_v20 }
  0x93   :  { %v245_v2 = vpop.permute.xlu1 %244 }
  0x94   :  { %v257_v14 = vsel %vm195_vm6, %v221_v59, %v245_v2 }
  0x95   :  { %vm265_vm11 = vcmp.eq.s32.totalorder %v1071_v45, %v257_v14 }
  0x96   :  { %v242_v3 = vpop.permute.xlu0 %241  ;;  %v273_v21 = vsel %vm265_vm11, 1.0, %v927_v33 }
  0x97   :  { %v227_v8 = vpop.permute.xlu1 %226  ;;  %v256_v15 = vsel %vm195_vm6, %v218_v60, %v242_v3 }
  0x98   :  { %vm264_vm12 = vcmp.eq.s32.totalorder %v1071_v45, %v256_v15 }
  0x99   :  { %v272_v22 = vsel %vm264_vm12, 1.0, %v927_v33 }
  0x9a   :  { %v224_v9 = vpop.permute.xlu0 %223  ;;  %v278_v26 = vpack.c.bf16 %v273_v21, %v272_v22 }
  0x9b   :  { %v251_v17 = vpop.permute.xlu1 %250 }
  0x9c   :  { %v259_v23 = vsel %vm195_vm6, %v227_v8, %v251_v17 }
  0x9d   :  { %vm267_vm13 = vcmp.eq.s32.totalorder %v1071_v45, %v259_v23 }
  0x9e   :  { %v248_v18 = vpop.permute.xlu0 %247  ;;  %v275_v27 = vsel %vm267_vm13, 1.0, %v927_v33 }
  0x9f   :  { %v258_v24 = vsel %vm195_vm6, %v224_v9, %v248_v18 }
  0xa0   :  { %vm266_vm14 = vcmp.eq.s32.totalorder %v1071_v45, %v258_v24 }
  0xa1   :  { %v274_v28 = vsel %vm266_vm14, 1.0, %v927_v33 }
  0xa2   :  { %v279_v29 = vpack.c.bf16 %v275_v27, %v274_v28 }
  0xc7   :  { %v807_v61 = vpop.f32.mrf.mxu1 }
  0xc9   :  { %v801_v62 = vpop.f32.mrf.mxu0  ;;  %v157_v63 = vpop.f32.mrf.mxu1 }
  0xcb   :  { %v100_v0 = vpop.f32.mrf.mxu0  ;;  %v808_v1 = vpop.f32.mrf.mxu1 }
  0xcc   :  { %v175_v4 = vpack.c.bf16 %v808_v1, %v807_v61  ;;  %v392_v30 = vpop.xlane.xlu0 %391 }
  0xcd   :  { %v160_v5 = vpop.f32.mrf.mxu1  ;;  %v802_v7 = vpop.f32.mrf.mxu0  ;;  %v402_v31 = vmax.f32 %v392_v30, 1.0 }
  0xce   :  { %v174_v6 = vpack.c.bf16 %v160_v5, %v157_v63  ;;  %809 = vmatprep.subr.bf16.mxu1 %v175_v4  ;;  %v173_v10 = vpack.c.bf16 %v802_v7, %v801_v62  ;;  %v395_v50 = vpop.xlane.xlu1 %394 }
  0xcf   :  { %810 = vmatpush3.bf16.msra.mxu1 %v175_v4  ;;  %v103_v13 = vpop.f32.mrf.mxu0  ;;  %896 = vrcp.f32 %v402_v31  ;;  %v403_v52 = vmax.f32 %v395_v50, 1.0 }
  0xd0   :  { %811 = vmatprep.subr.bf16.mxu1 %v174_v6  ;;  %v172_v16 = vpack.c.bf16 %v103_v13, %v100_v0  ;;  %v398_v48 = vpop.xlane.xlu0 %397 }
  0xd1   :  { %v404_v54 = vmax.f32 %v398_v48, 1.0  ;;  %898 = vrcp.f32 %v403_v52 }
  0xd3   :  { %812 = vmatpush3.bf16.msra.mxu1 %v174_v6  ;;  %900 = vrcp.f32 %v404_v54 }
  0xd4   :  { %813 = vmatprep.subr.bf16.mxu1 %v173_v10  ;;  %v401_v55 = vpop.xlane.xlu0 %400 }
  0xd5   :  { %v405_v60 = vmax.f32 %v401_v55, 1.0 }
  0xd7   :  { %814 = vmatpush3.bf16.msra.mxu1 %v173_v10  ;;  %902 = vrcp.f32 %v405_v60 }
  0xd8   :  { %815 = vmatprep.subr.bf16.mxu1 %v172_v16 }
  0xdb   :  { %816 = vmatpush3.bf16.msra.mxu1 %v172_v16 }
  0xdc   :  { %v897_v32 = vpop.eup %896 }
  0xdd   :  { %v410_v35 = vmul.f32 %v897_v32, %v1057_v39  ;;  %v891_v39 = vld [vmem:[%s1166_s8 + $0x20] sm:$0xff]  }
  0xde   :  { %818 = vmatmul.mubr.msk.bf16.vlgmr.msra.gmra.mxu1 %vm286_vm2, %v277_v25  ;;  %853 = vmatprep.subr.bf16.mxu0 %v891_v39  ;;  %v899_v10 = vpop.eup %898  ;;  %v746_v25 = vld [vmem:[%s1167_s9] ss:$0 sm:$0xff] }
  0xdf   :  { %821 = vmatprep.mubr.msk.bf16.mxu1 %vm286_vm2, %v278_v26  ;;  %854 = vmatpush3.bf16.msra.mxu0 %v891_v39  ;;  %v411_v13 = vmul.f32 %v899_v10, %v1049_v34  ;;  %v894_v34 = vld [vmem:[%s1166_s8 + $0x8] sm:$0xff]  }
  0xe0   :  { %855 = vmatprep.subr.bf16.mxu0 %v892_v40  ;;  %v901_v11 = vpop.eup %900 }
  0xe1   :  { %v412_v16 = vmul.f32 %v901_v11, %v1062_v41  ;;  %v895_v41 = vld [vmem:[%s1166_s8] sm:$0xff]   ;;  %s929_s8 = smov [#allocation2]  }
  0xe2   :  { %s720_s9 = sshll.u32 %s929_s8, 4  ;;  %s721_s9 = int_to_ptr.vmem [resolvable:$true] %s720_s9 }
  0xe3   :  { %856 = vmatpush3.bf16.msra.mxu0 %v892_v40  ;;  %s904_s24 = scalar_lea.vmem %s721_s9, 128  ;;  %p909_p1 = scmp.lt.s32.totalorder %s721_s9, %s721_s9 }
  0xe4   :  { %857 = vmatprep.subr.bf16.mxu0 %v893_v42  ;;  %v903_v15 = vpop.eup %902  ;;  %p905_p0 = scmp.ne.s32.totalorder %s721_s9, %s904_s24  ;;  %p910_p2 = scmp.lt.s32.totalorder %s904_s24, %s904_s24 }
  0xe5   :  { %v413_v17 = vmul.f32 %v903_v15, %v1067_v43 }
  0xe6   :  { %822 = vmatmul.mubr.msk.bf16.gmra.mxu1 %vm286_vm2, %v279_v29  ;;  %v636_v29 = vpop.permute.xlu1 %635  ;;  %p911_p3 = por %p910_p2, %p909_p1 }
  0xe7   :  { %841 = vmatprep.mubr.msk.f32.mxu1 %vm286_vm2, %v410_v35  ;;  %858 = vmatpush3.bf16.msra.mxu0 %v893_v42  ;;  %vm637_vm0 = vcmp.eq.s32.totalorder %v1071_v45, %v636_v29 }
  0xe8   :  { %859 = vmatprep.subr.bf16.mxu0 %v894_v34  ;;  %v638_v35 = vsel %vm637_vm0, 1.0, %v927_v33  ;;  %p912_p4 = pnand %p911_p3, %p905_p0 }
  0xeb   :  { %860 = vmatpush3.bf16.msra.mxu0 %v894_v34 }
  0xec   :  { %861 = vmatprep.subr.bf16.mxu0 %v895_v41 }
  0xef   :  { %862 = vmatpush3.bf16.msra.mxu0 %v895_v41 }
 0x19e   :  { %v819_v44 = vpop.f32.mrf.mxu1 }
 0x19f   :  { %v342_v4 = vadd.f32 %v819_v44, %v736_v56 }
 0x1a0   :  { %v333_v46 = vpop.f32.mrf.mxu1 }
 0x1a1   :  { %v366_v8 = vmax.f32 %v342_v4, 0.0  ;;  %v334_v9 = vadd.f32 %v736_v56, %v333_v46 }
 0x1a2   :  { %v820_v47 = vpop.f32.mrf.mxu1 }
 0x1a3   :  { %v345_v2 = vadd.f32 %v820_v47, %v736_v56  ;;  %v364_v14 = vmax.f32 %v334_v9, 0.0 }
 0x1a4   :  { %v336_v49 = vpop.f32.mrf.mxu1 }
 0x1a5   :  { %v367_v6 = vmax.f32 %v345_v2, 0.0  ;;  %v337_v7 = vadd.f32 %v736_v56, %v336_v49 }
 0x1a6   :  { %v823_v51 = vpop.f32.mrf.mxu1 }
 0x1a7   :  { %v358_v58 = vadd.f32 %v823_v51, %v736_v56  ;;  %v365_v12 = vmax.f32 %v337_v7, 0.0 }
 0x1a8   :  { %v349_v53 = vpop.f32.mrf.mxu1 }
 0x1a9   :  { %v370_v0 = vmax.f32 %v358_v58, 0.0  ;;  %v350_v1 = vadd.f32 %v736_v56, %v349_v53 }
 0x1aa   :  { %v824_v57 = vpop.f32.mrf.mxu1 }
 0x1ab   :  { %v361_v59 = vadd.f32 %v824_v57, %v736_v56  ;;  %v368_v5 = vmax.f32 %v350_v1, 0.0 }
 0x1ac   :  { %v352_v61 = vpop.f32.mrf.mxu1 }
 0x1ad   :  { %v371_v62 = vmax.f32 %v361_v59, 0.0  ;;  %v353_v63 = vadd.f32 %v736_v56, %v352_v61 }
 0x1af   :  { %825 = vmatprep.subr.mxu1 %v371_v62  ;;  %v369_v3 = vmax.f32 %v353_v63, 0.0 }
 0x1b0   :  { %826 = vmatpush3.msra.mxu1 %v371_v62 }
 0x1b1   :  { %827 = vmatprep.subr.mxu1 %v370_v0 }
 0x1b2   :  { %828 = vmatpush3.msra.mxu1 %v370_v0 }
 0x1b3   :  { %829 = vmatprep.subr.mxu1 %v369_v3 }
 0x1b4   :  { %830 = vmatpush3.msra.mxu1 %v369_v3 }
 0x1b5   :  { %831 = vmatprep.subr.mxu1 %v368_v5 }
 0x1b6   :  { %832 = vmatpush3.msra.mxu1 %v368_v5 }
 0x1b7   :  { %833 = vmatprep.subr.mxu1 %v367_v6 }
 0x1b8   :  { %834 = vmatpush3.msra.mxu1 %v367_v6 }
 0x1b9   :  { %835 = vmatprep.subr.mxu1 %v366_v8 }
 0x1ba   :  { %836 = vmatpush3.msra.mxu1 %v366_v8 }
 0x1bb   :  { %837 = vmatprep.subr.mxu1 %v365_v12 }
 0x1bc   :  { %838 = vmatpush3.msra.mxu1 %v365_v12 }
 0x1bd   :  { %839 = vmatprep.subr.mxu1 %v364_v14 }
 0x1be   :  { %840 = vmatpush3.msra.mxu1 %v364_v14 }
 0x1bf   :  { %842 = vmatmul.mubr.msk.f32.vlgmr.msra.gmra.mxu1 %vm286_vm2, %v411_v13  ;;  %867 = vmatprep.subr.mxu1 %v927_v33 }
 0x1c0   :  { %844 = vmatprep.mubr.msk.f32.mxu1 %vm286_vm2, %v412_v16 }
 0x1c3   :  { %845 = vmatmul.mubr.msk.f32.gmra.mxu1 %vm286_vm2, %v413_v17 }
 0x1c4   :  { %875 = vmatprep.mubr.msk.f32.mxu1 %vm928_vm15, %v927_v33 }
 0x27f   :  { %v843_v18 = vpop.f32.mrf.mxu1 }
 0x281   :  { %v492_v43 = vpop.f32.mrf.mxu1 }
 0x282   :  { %v511_v19 = vpack.c.bf16 %v843_v18, %v492_v43 }
 0x283   :  { %v846_v20 = vpop.f32.mrf.mxu1 }
 0x284   :  { %863 = vmatprep.mubr.bf16.mxu0 %v511_v19 }
 0x285   :  { %v502_v21 = vpop.f32.mrf.mxu1 }
 0x286   :  { %v512_v22 = vpack.c.bf16 %v846_v20, %v502_v21 }
 0x288   :  { %864 = vmatmul.mubr.bf16.vlgmr.msra.gmra.mxu0 %v512_v22 }
 0x348   :  { %v865_v23 = vpop.f32.mrf.mxu0 }
 0x349   :  { %v627_v30 = vadd.f32 %v865_v23, %v746_v25 }
 0x34a   :  { %v618_v24 = vpop.f32.mrf.mxu0 }
 0x34b   :  { %v619_v32 = vadd.f32 %v746_v25, %v618_v24 }
 0x34c   :  { %v866_v26 = vpop.f32.mrf.mxu0 }
 0x34d   :  { %v630_v27 = vadd.f32 %v866_v26, %v746_v25 }
 0x34e   :  { %v621_v28 = vpop.f32.mrf.mxu0 }
 0x34f   :  { %868 = vmatpush3.msra.mxu1 %v630_v27  ;;  %v622_v31 = vadd.f32 %v746_v25, %v621_v28 }
 0x350   :  { %869 = vmatprep.subr.mxu1 %v927_v33 }
 0x351   :  { %870 = vmatpush3.msra.mxu1 %v627_v30 }
 0x352   :  { %871 = vmatprep.subr.mxu1 %v927_v33 }
 0x353   :  { %872 = vmatpush3.msra.mxu1 %v622_v31 }
 0x354   :  { %873 = vmatprep.subr.mxu1 %v927_v33 }
 0x355   :  { %874 = vmatpush3.msra.mxu1 %v619_v32 }
 0x356   :  { %876 = vmatmul.mubr.msk.f32.vlgmr.msra.gmra.mxu1 %vm639_vm1, %v638_v35 }
 0x416   :  { %v709_v36 = vpop.f32.mrf.mxu1 }
 0x417   :  { %713 = vst [vmem:[#allocation2] sm:$0xff] %v709_v36 }
 0x418   :  { %v877_v37 = vpop.f32.mrf.mxu1 }
 0x419   :  { %915 = shalt.err (!%p912_p4)
}
 0x41a   :  { %723 = dma.vmem_to_hbm [thread:$0]  %s721_s9, 128, %s1168_s10, [#allocation3]  }
 0x41b   :  { %924 = dma.done.wait [#allocation3], 128  }
 0x41c   :  { %925 = vsyncadd [#allocation3], 4294967168 }
 0x41d   :  { %727 = vsyncpa [#allocation3], 1 }

</bundles_post_ra>
